<compile_context>
chip_gen: v6e
topology: v6e:2x2x1
jax: 0.10.0
libtpu: 0.0.40
codegen_flags: <defaults>
</compile_context>

<pallas_src>
import jax
import jax.numpy as jnp
from jax import lax
from jax.experimental import pallas as pl
from jax.experimental.pallas import tpu as pltpu


def _round_up(x, m):
    return (x + m - 1) // m * m


def _cdiv(a, b):
    return (a + b - 1) // b


# --------------------------------------------------------------------------
# Path 1: one-hot MXU gather (table VMEM-resident)
# --------------------------------------------------------------------------
def _embed_onehot_kernel(idx_ref, table_ref, out_ref):
    # idx_ref:   (1, 1, TILE_N) int32   lane-dense index tile
    # table_ref: (CATS_P, D_PAD)        full VMEM-resident table
    # out_ref:   (TILE_N, D_PAD)
    idx = idx_ref[0]                                         # (1, TILE_N)
    cats_p = table_ref.shape[0]
    tile_n = idx.shape[-1]
    cats = lax.broadcasted_iota(jnp.int32, (cats_p, tile_n), 0)
    onehot_t = (cats == idx).astype(table_ref.dtype)         # (CATS_P, TILE_N)
    # out[n, d] = sum_c onehot_t[c, n] * table[c, d]   (MXU gather)
    out = lax.dot_general(
        onehot_t, table_ref[...],
        dimension_numbers=(((0,), (0,)), ((), ())),
        preferred_element_type=jnp.float32,
        precision=lax.Precision.HIGHEST,   # keep f32 rows bit-exact vs. take()
    )
    out_ref[...] = out.astype(out_ref.dtype)


def _onehot_gather(flat_idx, table_padded, *, cats_p, tile_n, num_tiles,
                   vmem_needed):
    num_cats, d_pad = table_padded.shape
    if cats_p != num_cats:
        table_padded = jnp.pad(table_padded, ((0, cats_p - num_cats), (0, 0)))
    n = flat_idx.shape[0]
    n_pad = num_tiles * tile_n
    # Lane-dense index layout: (num_tiles, 1, tile_n) -> (1, 1, tile_n) blocks.
    idx3 = jnp.pad(flat_idx, (0, n_pad - n)).reshape(num_tiles, 1, tile_n)

    elt = table_padded.dtype.itemsize
    cost = pl.CostEstimate(
        flops=2 * n_pad * cats_p * d_pad,
        transcendentals=0,
        bytes_accessed=cats_p * d_pad * elt + n_pad * 4 + n_pad * d_pad * elt,
    )
    # Always set the scoped-VMEM limit (v5e defaults to 16 MiB); stay within
    # the 64 MiB/TC physical budget of v7x.
    vmem_limit = int(min(max(vmem_needed, 32 << 20), 64 << 20))

    return pl.pallas_call(
        _embed_onehot_kernel,
        out_shape=jax.ShapeDtypeStruct((n_pad, d_pad), table_padded.dtype),
        grid=(num_tiles,),
        in_specs=[
            # Per-tile, lane-dense index block.
            pl.BlockSpec((1, 1, tile_n), lambda i: (i, 0, 0)),
            # Whole table, constant index_map -> fetched once and reused;
            # Buffered(1) keeps it single-buffered (honest VMEM accounting).
            pl.BlockSpec((cats_p, d_pad), lambda i: (0, 0),
                         pipeline_mode=pl.Buffered(1)),
        ],
        out_specs=pl.BlockSpec((tile_n, d_pad), lambda i: (i, 0)),
        compiler_params=pltpu.CompilerParams(
            dimension_semantics=("parallel",),
            vmem_limit_bytes=vmem_limit,
        ),
        cost_estimate=cost,
    )(idx3, table_padded)


# --------------------------------------------------------------------------
# Path 2: row-DMA gather fallback (large vocabularies / non-resident tables)
# --------------------------------------------------------------------------
def _embed_row_gather_kernel(idx_smem_ref, row_ref, out_ref):
    # idx_smem_ref: (N,) int32 scalar-prefetched indices (used by index_maps)
    # row_ref:      (1, 1, D_PAD)  the gathered table row
    # out_ref:      (1, 1, D_PAD)
    del idx_smem_ref
    out_ref[...] = row_ref[...]


def _dma_row_gather(flat_idx, table_padded):
    # TODO(synk): replace the one-row-per-grid-step Element gather with a
    # multi-row, manually double-buffered DMA gather (P4) to amortize the
    # ~0.35 us/step overhead for very large N.
    n = flat_idx.shape[0]
    num_cats, d_pad = table_padded.shape
    table3 = table_padded.reshape(num_cats, 1, d_pad)
    out3 = pl.pallas_call(
        _embed_row_gather_kernel,
        out_shape=jax.ShapeDtypeStruct((n, 1, d_pad), table_padded.dtype),
        grid_spec=pltpu.PrefetchScalarGridSpec(
            num_scalar_prefetch=1,
            grid=(n,),
            in_specs=[pl.BlockSpec((pl.Element(1), 1, d_pad),
                                   lambda i, idx: (idx[i], 0, 0))],
            out_specs=pl.BlockSpec((1, 1, d_pad), lambda i, idx: (i, 0, 0)),
        ),
        compiler_params=pltpu.CompilerParams(
            dimension_semantics=("arbitrary",)),
    )(flat_idx, table3)
    return out3.reshape(n, d_pad)


# --------------------------------------------------------------------------
# Wrapper (== CategoryEmbeddings.forward)
# --------------------------------------------------------------------------
def category_embeddings(cat_idx, emb_table, *, max_tile_n=1024,
                        onehot_max_cats=1024, vmem_budget_bytes=48 << 20,
                        force_dma_gather=False):
    """Equivalent of nn.Embedding(num_cats, embedding_dim)(cat_idx)."""
    orig_shape = cat_idx.shape
    num_cats, d = emb_table.shape

    flat_idx = cat_idx.reshape(-1).astype(jnp.int32)
    # PyTorch nn.Embedding raises on out-of-range indices; on-device we clamp
    # so the kernel is always well-defined (documented semantic difference).
    flat_idx = jnp.clip(flat_idx, 0, num_cats - 1)
    n = flat_idx.shape[0]

    # Lane-dense embeddings: pad D up to a multiple of 128 (sliced off after).
    d_pad = _round_up(d, 128)
    table_padded = emb_table
    if d_pad != d:
        table_padded = jnp.pad(emb_table, ((0, 0), (0, d_pad - d)))
    elt = table_padded.dtype.itemsize

    # Balanced tiling over N (avoids near-2x remainder-tile waste), multiple
    # of 8 sublanes; for moderate N force >=2 grid steps so v7x megacore's
    # second TensorCore has work.
    cats_p = _round_up(num_cats, 8)
    num_tiles = _cdiv(n, max_tile_n)
    if num_tiles == 1 and n >= 128:
        num_tiles = 2
    tile_n = _round_up(_cdiv(n, num_tiles), 8)
    num_tiles = _cdiv(n, tile_n)

    # Per-core VMEM for the one-hot path: single-buffered table +
    # double-buffered index/output tiles + compiler slack.
    vmem_needed = (cats_p * d_pad * elt            # resident table (Buffered(1))
                   + 2 * 8 * tile_n * 4            # (1,1,tile_n) idx tiles (8-sublane pad)
                   + 2 * tile_n * d_pad * elt      # output tiles
                   + (2 << 20))                    # slack

    use_onehot = (not force_dma_gather
                  and num_cats <= onehot_max_cats
                  and vmem_needed <= vmem_budget_bytes)
    # TODO(synk): if the model tolerates bf16 embeddings, cast the table and
    # out_shape to bf16 here -- halves HBM traffic on this store-bound kernel.

    if use_onehot:
        out_flat = _onehot_gather(flat_idx, table_padded, cats_p=cats_p,
                                  tile_n=tile_n, num_tiles=num_tiles,
                                  vmem_needed=vmem_needed)
    else:
        out_flat = _dma_row_gather(flat_idx, table_padded)

    return out_flat[:n, :d].reshape(*orig_shape, d)


if __name__ == "__main__":
    key = jax.random.PRNGKey(0)
    k_table, k_idx, k_table2, k_idx2 = jax.random.split(key, 4)

    # Small shapes consistent with the GETNext module.
    num_cats, embedding_dim = 16, 128
    batch, seq = 2, 8

    # nn.Embedding default init: N(0, 1)
    emb_table = jax.random.normal(k_table, (num_cats, embedding_dim), jnp.float32)
    cat_idx = jax.random.randint(k_idx, (batch, seq), 0, num_cats, dtype=jnp.int32)
    ref = jnp.take(emb_table, cat_idx, axis=0)

    # 1) default dispatch (one-hot MXU gather)
    out = jax.block_until_ready(category_embeddings(cat_idx, emb_table))
    assert out.shape == (batch, seq, embedding_dim)
    assert jnp.allclose(out, ref), "one-hot path mismatch vs reference gather"

    # 2) forced row-DMA gather fallback (large-table path)
    out_dma = jax.block_until_ready(
        category_embeddings(cat_idx, emb_table, force_dma_gather=True))
    assert jnp.allclose(out_dma, ref), "row-gather path mismatch vs reference"

    # 3) odd shapes: exercise D / num_cats padding and remainder-row masking
    nc2, d2 = 10, 40
    table2 = jax.random.normal(k_table2, (nc2, d2), jnp.float32)
    idx2 = jax.random.randint(k_idx2, (3, 5), 0, nc2, dtype=jnp.int32)
    out2 = jax.block_until_ready(category_embeddings(idx2, table2))
    assert out2.shape == (3, 5, d2)
    assert jnp.allclose(out2, jnp.take(table2, idx2, axis=0)), "padded path mismatch"

    print("KERNEL_OK")
</pallas_src>

<mosaic_0001>
module attributes {stable_mosaic.version = 11 : i64} {
  func.func @_embed_onehot_kernel(%arg0: i32, %arg1: memref<1x1x16xi32, #tpu.memory_space<vmem>>, %arg2: memref<16x128xf32, #tpu.memory_space<vmem>>, %arg3: memref<16x128xf32, #tpu.memory_space<vmem>>) attributes {dimension_semantics = [#tpu.dimension_semantics<parallel>], iteration_bounds = array<i64: 1>, scalar_prefetch = 0 : i64, scratch_operands = 0 : i64, tpu.core_type = #tpu.core_type<tc>, window_params = [{transform_indices = @transform_0, window_bounds = array<i64: 1, 1, 16>}, {pipeline_mode = #tpu.pipeline_mode<synchronous>, transform_indices = @transform_1, window_bounds = array<i64: 16, 128>}, {transform_indices = @transform_2, window_bounds = array<i64: 16, 128>}]} {
    %c0 = arith.constant 0 : index
    %c0_0 = arith.constant 0 : index
    %c0_1 = arith.constant 0 : index
    %0 = vector.load %arg1[%c0, %c0_0, %c0_1] : memref<1x1x16xi32, #tpu.memory_space<vmem>>, vector<1x1x16xi32>
    %1 = vector.shape_cast %0 : vector<1x1x16xi32> to vector<1x16xi32>
    %2 = tpu.iota {dimensions = array<i32: 0>} : vector<16x16xi32>
    %3 = vector.broadcast %1 : vector<1x16xi32> to vector<16x16xi32>
    %4 = arith.cmpi eq, %2, %3 : vector<16x16xi32>
    %5 = arith.extui %4 : vector<16x16xi1> to vector<16x16xi32>
    %6 = arith.sitofp %5 : vector<16x16xi32> to vector<16x16xf32>
    %c0_2 = arith.constant 0 : index
    %c0_3 = arith.constant 0 : index
    %7 = vector.load %arg2[%c0_2, %c0_3] : memref<16x128xf32, #tpu.memory_space<vmem>>, vector<16x128xf32>
    %cst = arith.constant dense<0.000000e+00> : vector<16x128xf32>
    %8 = tpu.matmul %6, %7, %cst {dimension_numbers = #tpu.dot_dimension_numbers<[0], [0], [1], [1], [0, 1, 1, 1], [], []>, precision = #tpu.contract_precision<fp32>} : vector<16x16xf32>, vector<16x128xf32>, vector<16x128xf32> -> vector<16x128xf32>
    %c0_4 = arith.constant 0 : index
    %c0_5 = arith.constant 0 : index
    %9 = vector.load %arg3[%c0_4, %c0_5] : memref<16x128xf32, #tpu.memory_space<vmem>>, vector<16x128xf32>
    tpu.vector_store %arg3[%c0_4, %c0_5], %8 {strides = array<i32>} : memref<16x128xf32, #tpu.memory_space<vmem>>, vector<16x128xf32>,
    return
  }
  func.func @transform_0(%arg0: i32) -> (i32, i32, i32) {
    %c0_i32 = arith.constant 0 : i32
    %c0_i32_0 = arith.constant 0 : i32
    %c0_i32_1 = arith.constant 0 : i32
    return %arg0, %c0_i32, %c0_i32_0 : i32, i32, i32
  }
  func.func @transform_1(%arg0: i32) -> (i32, i32) {
    %c0_i32 = arith.constant 0 : i32
    %c0_i32_0 = arith.constant 0 : i32
    %c0_i32_1 = arith.constant 0 : i32
    return %c0_i32, %c0_i32_0 : i32, i32
  }
  func.func @transform_2(%arg0: i32) -> (i32, i32) {
    %c0_i32 = arith.constant 0 : i32
    %c0_i32_0 = arith.constant 0 : i32
    return %arg0, %c0_i32 : i32, i32
  }
}

</mosaic_0001>

<bundles_post_ra>
// kernel: tpu_custom_call.1
= control target key start
LH: loop header
LB: loop body
LE: loop exit
PB: predicated region body
PF: predicated region fallthrough
CT: control target
= control target key end

     0   :  { %7 = vsyncpa [#allocation3], 0  ;;  %s792_s0 = inlined_call_operand.hbm [shape: s32[1,1,16], index: 0, kind: input, shape index: {}]   ;;  %s793_s1 = inlined_call_operand.hbm [shape: f32[16,128], index: 1, kind: input, shape index: {}]   ;;  %s794_s2 = inlined_call_operand.hbm [shape: f32[16,128], index: 2, kind: output, shape index: {}]  }
   0x1   :  { %8 = vsyncpa [#allocation6], 0 }
   0x2   :  { %9 = vsyncpa [#allocation4], 0  ;;  %s756_s9 = smov [#allocation2]   ;;  %s757_s11 = smov [#allocation5]  }
   0x3   :  { %s16_s10 = sshll.u32 %s756_s9, 4  ;;  %s25_s12 = sshll.u32 %s757_s11, 4  ;;  %s17_s10 = int_to_ptr.vmem [resolvable:$true] %s16_s10  ;;  %s26_s12 = int_to_ptr.vmem [resolvable:$true] %s25_s12 }
   0x4   :  { %s698_s13 = scalar_lea.vmem %s17_s10, 16  ;;  %s702_s14 = scalar_lea.vmem %s17_s10, 32 }
   0x5   :  { %p699_p0 = scmp.ne.s32.totalorder %s17_s10, %s698_s13  ;;  %p703_p1 = scmp.lt.s32.totalorder %s17_s10, %s17_s10 }
   0x6   :  { %p704_p2 = scmp.lt.s32.totalorder %s702_s14, %s698_s13 }
   0x8   :  { %p705_p3 = por %p704_p2, %p703_p1 }
   0xa   :  { %p706_p4 = pnand %p705_p3, %p699_p0 }
   0xc   :  { %709 = shalt.err (!%p706_p4)
}
   0xd   :  { %19 = dma.hbm_to_vmem [thread:$0]  %s792_s0, 16, %s17_s10, [#allocation3]  }
   0xe   :  { %s718_s17 = scalar_lea.vmem %s26_s12, 256  ;;  %p723_p6 = scmp.lt.s32.totalorder %s26_s12, %s26_s12 }
   0xf   :  { %p719_p5 = scmp.ne.s32.totalorder %s26_s12, %s718_s17  ;;  %p724_p7 = scmp.lt.s32.totalorder %s718_s17, %s718_s17 }
  0x11   :  { %p725_p8 = por %p724_p7, %p723_p6 }
  0x13   :  { %p726_p9 = pnand %p725_p8, %p719_p5 }
  0x15   :  { %729 = shalt.err (!%p726_p9)
}
  0x16   :  { %s758_s18 = smov 128   ;;  %s759_s19 = smov 8  }
  0x17   :  { %31 = dma.hbm_to_vmem [thread:$0]  %s793_s1, 256, %s26_s12, [#allocation6], %s758_s18, %s758_s18, %s759_s19  }
  0x18   :  { %750 = dma.done.wait [#allocation3], 16  }
  0x19   :  { %751 = vsyncadd [#allocation3], 4294967280 }
  0x1a   :  { %752 = dma.done.wait [#allocation6], 256  }
  0x1b   :  { %753 = vsyncadd [#allocation6], 4294967040  ;;  %v39_v0 = vlaneseq  ;;  %v615_v3 = vld [vmem:[#allocation2] ss:$0 sm:$0xff]  ;;  %v53_v4 = vld [vmem:[#allocation5 + $0x8] sm:$0xff]  ;;  %v760_v8 = vmov 0.0  }
  0x1c   :  { %v52_v5 = vld [vmem:[#allocation5] sm:$0xff]  ;;  %v122_v6 = vand.u32 4294901760, %v53_v4  ;;  %vm86_vm2 = vcmask 130048   ;;  %s761_s0 = smov [#allocation7]  }
  0x1d   :  { %v40_v1 = vshrl.u32 %v39_v0, 7  ;;  %v125_v7 = vand.u32 4294901760, %v52_v5  ;;  %s602_s1 = sshll.u32 %s761_s0, 4  ;;  %s603_s1 = int_to_ptr.vmem [resolvable:$true] %s602_s1 }
  0x1e   :  { %v210_v10 = vsub.f32 %v53_v4, %v122_v6  ;;  %642 = vmatprep.subr.mxu0 %v122_v6  ;;  %s730_s22 = scalar_lea.vmem %s603_s1, 256  ;;  %p735_p11 = scmp.lt.s32.totalorder %s603_s1, %s603_s1 }
  0x1f   :  { %v41_v2 = vadd.s32 8, %v40_v1  ;;  %vm46_vm0 = vcmp.eq.s32.totalorder %v40_v1, %v615_v3  ;;  %v217_v11 = vsub.f32 %v52_v5, %v125_v7  ;;  %643 = vmatpush3.msra.mxu0 %v122_v6  ;;  %p731_p10 = scmp.ne.s32.totalorder %s603_s1, %s730_s22  ;;  %p736_p12 = scmp.lt.s32.totalorder %s730_s22, %s730_s22 }
  0x20   :  { %v616_v9 = vsel %vm46_vm0, 1.0, %v760_v8  ;;  %v211_v13 = vand.u32 4294901760, %v210_v10  ;;  %644 = vmatprep.subr.mxu0 %v125_v7 }
  0x21   :  { %vm47_vm1 = vcmp.eq.s32.totalorder %v41_v2, %v615_v3  ;;  %54 = vxpose.xlu0.b32.start [1/2] (short) (narrow) %v616_v9, 16  ;;  %v218_v14 = vand.u32 4294901760, %v217_v11  ;;  %645 = vmatpush3.msra.mxu0 %v125_v7  ;;  %p737_p13 = por %p736_p12, %p735_p11 }
  0x22   :  { %v617_v12 = vsel %vm47_vm1, 1.0, %v760_v8  ;;  %v212_v15 = vsub.f32 %v210_v10, %v211_v13  ;;  %656 = vmatprep.subr.mxu0 %v210_v10 }
  0x23   :  { %v219_v16 = vsub.f32 %v217_v11, %v218_v14  ;;  %p738_p0 = pnand %p737_p13, %p731_p10 }
  0x24   :  { %v213_v17 = vand.u32 4294901760, %v212_v15 }
  0x25   :  { %55 = vxpose.xlu0.b32.end [2/2] (short) (narrow) %v617_v12, 16  ;;  %v220_v18 = vand.u32 4294901760, %v219_v16 }
  0x26   :  { %649 = vmatprep.subr.mxu1 %v213_v17 }
  0x27   :  { %650 = vmatpush3.msra.mxu1 %v213_v17 }
  0x28   :  { %651 = vmatprep.subr.mxu1 %v220_v18 }
  0x29   :  { %652 = vmatpush3.msra.mxu1 %v220_v18 }
  0x2a   :  { %663 = vmatprep.subr.mxu1 %v122_v6 }
  0x9d   :  { %v70_v19 = vpop.trf.xlu0 }
  0x9e   :  { %v88_v20 = vsel %vm86_vm2, %v70_v19, 0 }
  0x9f   :  { %v160_v21 = vand.u32 4294901760, %v88_v20 }
  0xa1   :  { %v161_v22 = vsub.f32 %v88_v20, %v160_v21  ;;  %653 = vmatprep.mubr.f32.mxu1 %v160_v21  ;;  %v71_v23 = vpop.trf.xlu0 }
  0xa2   :  { %v91_v24 = vsel %vm86_vm2, %v71_v23, 0 }
  0xa3   :  { %v170_v25 = vand.u32 4294901760, %v91_v24  ;;  %v162_v26 = vand.u32 4294901760, %v161_v22 }
  0xa5   :  { %v171_v27 = vsub.f32 %v91_v24, %v170_v25  ;;  %654 = vmatmul.mubr.f32.vlgmr.msra.gmra.mxu1 %v170_v25  ;;  %v163_v28 = vsub.f32 %v161_v22, %v162_v26 }
  0xa6   :  { %664 = vmatpush3.msra.mxu1 %v122_v6  ;;  %667 = vmatprep.mubr.f32.mxu1 %v162_v26 }
  0xa7   :  { %v172_v29 = vand.u32 4294901760, %v171_v27  ;;  %665 = vmatprep.subr.mxu1 %v125_v7  ;;  %v164_v30 = vand.u32 4294901760, %v163_v28 }
  0xa8   :  { %666 = vmatpush3.msra.mxu1 %v125_v7 }
  0xa9   :  { %646 = vmatprep.mubr.f32.mxu0 %v164_v30  ;;  %668 = vmatmul.mubr.f32.vlgmr.msra.gmra.mxu1 %v172_v29  ;;  %v173_v31 = vsub.f32 %v171_v27, %v172_v29 }
  0xaa   :  { %677 = vmatprep.subr.mxu1 %v122_v6  ;;  %681 = vmatprep.mubr.f32.mxu1 %v160_v21 }
  0xab   :  { %678 = vmatpush3.msra.mxu1 %v122_v6  ;;  %v174_v32 = vand.u32 4294901760, %v173_v31 }
  0xac   :  { %679 = vmatprep.subr.mxu1 %v125_v7 }
  0xad   :  { %680 = vmatpush3.msra.mxu1 %v125_v7  ;;  %647 = vmatmul.mubr.f32.vlgmr.msra.gmra.mxu0 %v174_v32 }
  0xae   :  { %657 = vmatpush3.msra.mxu0 %v210_v10  ;;  %682 = vmatmul.mubr.f32.vlgmr.msra.gmra.mxu1 %v170_v25 }
  0xaf   :  { %658 = vmatprep.subr.mxu0 %v217_v11  ;;  %660 = vmatprep.mubr.f32.mxu0 %v161_v22 }
  0xb0   :  { %659 = vmatpush3.msra.mxu0 %v217_v11 }
  0xb1   :  { %670 = vmatprep.subr.mxu0 %v211_v13  ;;  %661 = vmatmul.mubr.f32.vlgmr.msra.gmra.mxu0 %v171_v27 }
  0xb2   :  { %671 = vmatpush3.msra.mxu0 %v211_v13  ;;  %674 = vmatprep.mubr.f32.mxu0 %v160_v21 }
  0xb3   :  { %672 = vmatprep.subr.mxu0 %v218_v14 }
  0xb4   :  { %673 = vmatpush3.msra.mxu0 %v218_v14 }
  0xb5   :  { %675 = vmatmul.mubr.f32.vlgmr.msra.gmra.mxu0 %v170_v25 }
 0x165   :  { %v655_v33 = vpop.f32.mrf.mxu1 }
 0x167   :  { %v257_v34 = vpop.f32.mrf.mxu1 }
 0x169   :  { %v669_v35 = vpop.f32.mrf.mxu1 }
 0x16b   :  { %v421_v39 = vpop.f32.mrf.mxu1 }
 0x16d   :  { %v648_v36 = vpop.f32.mrf.mxu0 }
 0x16e   :  { %v264_v38 = vadd.f32 %v655_v33, %v648_v36  ;;  %v683_v46 = vpop.f32.mrf.mxu1 }
 0x16f   :  { %v166_v37 = vpop.f32.mrf.mxu0 }
 0x170   :  { %v258_v41 = vadd.f32 %v257_v34, %v166_v37  ;;  %v585_v53 = vpop.f32.mrf.mxu1 }
 0x171   :  { %v662_v40 = vpop.f32.mrf.mxu0 }
 0x172   :  { %v347_v42 = vadd.f32 %v662_v40, %v264_v38 }
 0x173   :  { %v339_v43 = vpop.f32.mrf.mxu0 }
 0x174   :  { %v340_v44 = vadd.f32 %v339_v43, %v258_v41  ;;  %v430_v45 = vadd.f32 %v669_v35, %v347_v42 }
 0x175   :  { %v676_v47 = vpop.f32.mrf.mxu0 }
 0x176   :  { %v513_v48 = vadd.f32 %v676_v47, %v430_v45  ;;  %v422_v49 = vadd.f32 %v421_v39, %v340_v44 }
 0x177   :  { %v506_v50 = vpop.f32.mrf.mxu0 }
 0x178   :  { %v592_v51 = vadd.f32 %v683_v46, %v513_v48  ;;  %v507_v52 = vadd.f32 %v506_v50, %v422_v49 }
 0x17a   :  { %596 = vst [vmem:[#allocation7 + $0x8] sm:$0xff] %v592_v51  ;;  %v586_v54 = vadd.f32 %v585_v53, %v507_v52 }
 0x17c   :  { %595 = vst [vmem:[#allocation7] sm:$0xff] %v586_v54 }
 0x17d   :  { %741 = shalt.err (!%p738_p0)
}
 0x17e   :  { %608 = dma.vmem_to_hbm [thread:$0]  %s603_s1, 256, %s794_s2, [#allocation4], %s758_s18, %s758_s18, %s759_s19  }
 0x17f   :  { %754 = dma.done.wait [#allocation4], 256  }
 0x180   :  { %755 = vsyncadd [#allocation4], 4294967040 }
 0x181   :  { %612 = vsyncpa [#allocation3], 1 }
 0x182   :  { %613 = vsyncpa [#allocation6], 1 }
 0x183   :  { %614 = vsyncpa [#allocation4], 1 }

</bundles_post_ra>
